<compile_context>
chip_gen: v6e
topology: v6e:2x2x1
jax: 0.10.0
libtpu: 0.0.40
codegen_flags: <defaults>
</compile_context>

<pallas_src>
import math

import jax
import jax.numpy as jnp
from jax.experimental import pallas as pl
from jax.experimental.pallas import tpu as pltpu


def rnn_fc_kernel(x_ref, h0_ref, wih_ref, whh_ref, b_ref, wfc_ref, bfc_ref,
                  out_ref):
    """Single-program kernel: full RNN recurrence + FC head (padded shapes).

    x_ref  : (T, Bp, I)    time-major input, batch zero-padded, I = real 4
    h0_ref : (Bp, Hp)      initial hidden state (zero-padded), f32
    wih_ref: (I, Hp)       W_ih^T (zero-padded on H), f32
    whh_ref: (Hp, Hp)      W_hh^T (zero-padded), bf16
    b_ref  : (1, Hp)       b_ih + b_hh (pre-summed, zero-padded), f32
    wfc_ref: (Hp, Op)      W_fc^T (zero-padded), f32
    bfc_ref: (1, Op)       b_fc (zero-padded), f32
    out_ref: (Bp, Op)      f32
    """
    T, Bp, I = x_ref.shape
    Hp = whh_ref.shape[0]

    # --- Input projection on the VPU over the I=4 real channels. -----------
    # u[t] = x_t @ W_ih^T + (b_ih + b_hh), built as I rank-1 broadcast
    # multiply-adds.  Off the serial chain; the LLO scheduler interleaves it
    # under the MXU-latency-bound recurrence.  Bias broadcast happens once.
    xv = x_ref[...]                                   # (T, Bp, I) f32
    wih = wih_ref[...]                                # (I, Hp)    f32
    u = xv[:, :, 0:1] * wih[0:1, :] + b_ref[...]      # (T, Bp, Hp)
    for i in range(1, I):
        u = u + xv[:, :, i:i + 1] * wih[i:i + 1, :]

    # --- Statically unrolled recurrence (T is a Python int). ---------------
    # Serial chain per step: bf16 h @ W_hh (f32 accumulate) + f32 add + tanh.
    # W_hh is read from the ref inside the loop (invariant load hoisted by
    # the compiler; no loop-spanning f32 copy).
    h = h0_ref[...]                                   # (Bp, Hp) f32
    for t in range(T):
        z = u[t] + jnp.dot(h.astype(jnp.bfloat16), whh_ref[...],
                           preferred_element_type=jnp.float32)
        h = jnp.tanh(z)                               # f32 EUP

    # --- FC head on the last hidden state (runs once, keep f32). -----------
    out = (jnp.dot(h, wfc_ref[...], preferred_element_type=jnp.float32)
           + bfc_ref[...])
    out_ref[...] = out.astype(out_ref.dtype)


def init_params(key, input_size=4, hidden_size=20, out_size=4):
    """Deterministic init mimicking PyTorch's uniform(-1/sqrt(H), 1/sqrt(H))."""
    k_rnn = 1.0 / math.sqrt(hidden_size)
    k_fc = 1.0 / math.sqrt(hidden_size)
    keys = jax.random.split(key, 6)
    params = {
        "W_ih": jax.random.uniform(keys[0], (hidden_size, input_size),
                                   jnp.float32, -k_rnn, k_rnn),
        "W_hh": jax.random.uniform(keys[1], (hidden_size, hidden_size),
                                   jnp.float32, -k_rnn, k_rnn),
        "b_ih": jax.random.uniform(keys[2], (hidden_size,),
                                   jnp.float32, -k_rnn, k_rnn),
        "b_hh": jax.random.uniform(keys[3], (hidden_size,),
                                   jnp.float32, -k_rnn, k_rnn),
        "W_fc": jax.random.uniform(keys[4], (out_size, hidden_size),
                                   jnp.float32, -k_fc, k_fc),
        "b_fc": jax.random.uniform(keys[5], (out_size,),
                                   jnp.float32, -k_fc, k_fc),
    }
    return params


def _round_up(v, m):
    return ((v + m - 1) // m) * m


def _pad_to(a, shape):
    pads = [(0, s - d) for d, s in zip(a.shape, shape)]
    return jnp.pad(a, pads)


def lstm_forward(x, h0, params):
    """x: (B, T, I) batch-first, h0: (B, H). Returns (B, 4)."""
    B, T, I = x.shape
    H = params["W_hh"].shape[0]
    O = params["W_fc"].shape[0]

    # Sublane/lane-dense padded sizes.  Zero padding is exact: padded hidden
    # columns stay identically zero through the bf16 cast, matmul and tanh,
    # and padded output columns are zero (zero W_fc columns / b_fc entries).
    Bp = _round_up(max(B, 8), 8)
    Hp = _round_up(H, 128)
    Op = _round_up(O, 128)

    # Layout glue in plain JAX (tiny; fused by XLA).  Note: the input dim I
    # is NOT padded to 128 any more — the kernel projects over the 4 real
    # channels on the VPU.
    x_tbi = jnp.transpose(x, (1, 0, 2)).astype(jnp.float32)       # (T, B, I)
    x_p = _pad_to(x_tbi, (T, Bp, I))
    h0_p = _pad_to(h0.astype(jnp.float32), (Bp, Hp))
    wih_p = _pad_to(params["W_ih"].T.astype(jnp.float32), (I, Hp))  # (I, Hp)
    # Recurrent weight pre-cast to bf16 (halves DMA bytes + vregs; the MXU
    # accumulates in f32 via preferred_element_type).
    whh_p = _pad_to(params["W_hh"].T, (Hp, Hp)).astype(jnp.bfloat16)
    b_p = _pad_to((params["b_ih"] + params["b_hh"]).reshape(1, H), (1, Hp))
    wfc_p = _pad_to(params["W_fc"].T, (Hp, Op))                     # (Hp, Op)
    bfc_p = _pad_to(params["b_fc"].reshape(1, O), (1, Op))          # (1, Op)

    cost = pl.CostEstimate(
        flops=2 * T * Bp * I * Hp         # VPU input projection
              + 2 * T * Bp * Hp * Hp      # recurrence h @ W_hh
              + 2 * Bp * Hp * Op,         # FC head
        transcendentals=T * Bp * Hp,
        bytes_accessed=4 * (x_p.size + h0_p.size + wih_p.size + b_p.size
                            + wfc_p.size + bfc_p.size + Bp * Op)
                       + 2 * whh_p.size,  # bf16
    )

    vmem = pl.BlockSpec(memory_space=pltpu.MemorySpace.VMEM)
    out_p = pl.pallas_call(
        rnn_fc_kernel,
        out_shape=jax.ShapeDtypeStruct((Bp, Op), jnp.float32),
        in_specs=[vmem] * 7,
        out_specs=vmem,
        cost_estimate=cost,
    )(x_p, h0_p, wih_p, whh_p, b_p, wfc_p, bfc_p)

    # Slice padding away outside the kernel (keeps in-kernel stores unmasked).
    return out_p[:B, :O]


def reference_forward(x, h0, params):
    """Pure-JAX f32 reference for a sanity check."""
    def step(h, x_t):
        h_new = jnp.tanh(x_t @ params["W_ih"].T + params["b_ih"]
                         + h @ params["W_hh"].T + params["b_hh"])
        return h_new, None
    xs = jnp.transpose(x, (1, 0, 2))                              # (T, B, I)
    h_last, _ = jax.lax.scan(step, h0, xs)
    return h_last @ params["W_fc"].T + params["b_fc"]


if __name__ == "__main__":
    B, T, I, H = 2, 8, 4, 20
    key = jax.random.PRNGKey(0)
    k_params, k_x, k_h0 = jax.random.split(key, 3)

    params = init_params(k_params, input_size=I, hidden_size=H, out_size=4)
    x = jax.random.normal(k_x, (B, T, I), dtype=jnp.float32)
    # Deterministic stand-in for the module's per-call torch.randn(1, B, H).
    h0 = jax.random.normal(k_h0, (B, H), dtype=jnp.float32)

    out = lstm_forward(x, h0, params)
    out = jax.block_until_ready(out)

    ref = reference_forward(x, h0, params)
    assert out.shape == (B, 4), out.shape
    # Tolerance loosened vs. the f32 build: recurrent matmul operands are bf16.
    assert jnp.allclose(out, ref, atol=2e-2, rtol=2e-2), (out, ref)

    print("KERNEL_OK")
</pallas_src>

<mosaic_0001>
module attributes {stable_mosaic.version = 11 : i64} {
  func.func @rnn_fc_kernel(%arg0: memref<8x8x4xf32, #tpu.memory_space<vmem>>, %arg1: memref<8x128xf32, #tpu.memory_space<vmem>>, %arg2: memref<4x128xf32, #tpu.memory_space<vmem>>, %arg3: memref<128x128xbf16, #tpu.memory_space<vmem>>, %arg4: memref<1x128xf32, #tpu.memory_space<vmem>>, %arg5: memref<128x128xf32, #tpu.memory_space<vmem>>, %arg6: memref<1x128xf32, #tpu.memory_space<vmem>>, %arg7: memref<8x128xf32, #tpu.memory_space<vmem>>) attributes {dimension_semantics = [], scalar_prefetch = 0 : i64, scratch_operands = 0 : i64, tpu.core_type = #tpu.core_type<tc>} {
    %c0 = arith.constant 0 : index
    %c0_0 = arith.constant 0 : index
    %c0_1 = arith.constant 0 : index
    %0 = vector.load %arg0[%c0, %c0_0, %c0_1] : memref<8x8x4xf32, #tpu.memory_space<vmem>>, vector<8x8x4xf32>
    %c0_2 = arith.constant 0 : index
    %c0_3 = arith.constant 0 : index
    %1 = vector.load %arg2[%c0_2, %c0_3] : memref<4x128xf32, #tpu.memory_space<vmem>>, vector<4x128xf32>
    %2 = vector.extract_strided_slice %0 {offsets = [0, 0, 0], sizes = [8, 8, 1], strides = [1, 1, 1]} : vector<8x8x4xf32> to vector<8x8x1xf32>
    %3 = vector.extract_strided_slice %1 {offsets = [0, 0], sizes = [1, 128], strides = [1, 1]} : vector<4x128xf32> to vector<1x128xf32>
    %4 = vector.shape_cast %3 : vector<1x128xf32> to vector<1x1x128xf32>
    %5 = vector.broadcast %2 : vector<8x8x1xf32> to vector<8x8x128xf32>
    %6 = vector.broadcast %4 : vector<1x1x128xf32> to vector<8x8x128xf32>
    %7 = arith.mulf %5, %6 : vector<8x8x128xf32>
    %c0_4 = arith.constant 0 : index
    %c0_5 = arith.constant 0 : index
    %8 = vector.load %arg4[%c0_4, %c0_5] : memref<1x128xf32, #tpu.memory_space<vmem>>, vector<1x128xf32>
    %9 = vector.shape_cast %8 : vector<1x128xf32> to vector<1x1x128xf32>
    %10 = vector.broadcast %9 : vector<1x1x128xf32> to vector<8x8x128xf32>
    %11 = arith.addf %7, %10 : vector<8x8x128xf32>
    %12 = vector.extract_strided_slice %0 {offsets = [0, 0, 1], sizes = [8, 8, 1], strides = [1, 1, 1]} : vector<8x8x4xf32> to vector<8x8x1xf32>
    %13 = vector.extract_strided_slice %1 {offsets = [1, 0], sizes = [1, 128], strides = [1, 1]} : vector<4x128xf32> to vector<1x128xf32>
    %14 = vector.shape_cast %13 : vector<1x128xf32> to vector<1x1x128xf32>
    %15 = vector.broadcast %12 : vector<8x8x1xf32> to vector<8x8x128xf32>
    %16 = vector.broadcast %14 : vector<1x1x128xf32> to vector<8x8x128xf32>
    %17 = arith.mulf %15, %16 : vector<8x8x128xf32>
    %18 = arith.addf %11, %17 : vector<8x8x128xf32>
    %19 = vector.extract_strided_slice %0 {offsets = [0, 0, 2], sizes = [8, 8, 1], strides = [1, 1, 1]} : vector<8x8x4xf32> to vector<8x8x1xf32>
    %20 = vector.extract_strided_slice %1 {offsets = [2, 0], sizes = [1, 128], strides = [1, 1]} : vector<4x128xf32> to vector<1x128xf32>
    %21 = vector.shape_cast %20 : vector<1x128xf32> to vector<1x1x128xf32>
    %22 = vector.broadcast %19 : vector<8x8x1xf32> to vector<8x8x128xf32>
    %23 = vector.broadcast %21 : vector<1x1x128xf32> to vector<8x8x128xf32>
    %24 = arith.mulf %22, %23 : vector<8x8x128xf32>
    %25 = arith.addf %18, %24 : vector<8x8x128xf32>
    %26 = vector.extract_strided_slice %0 {offsets = [0, 0, 3], sizes = [8, 8, 1], strides = [1, 1, 1]} : vector<8x8x4xf32> to vector<8x8x1xf32>
    %27 = vector.extract_strided_slice %1 {offsets = [3, 0], sizes = [1, 128], strides = [1, 1]} : vector<4x128xf32> to vector<1x128xf32>
    %28 = vector.shape_cast %27 : vector<1x128xf32> to vector<1x1x128xf32>
    %29 = vector.broadcast %26 : vector<8x8x1xf32> to vector<8x8x128xf32>
    %30 = vector.broadcast %28 : vector<1x1x128xf32> to vector<8x8x128xf32>
    %31 = arith.mulf %29, %30 : vector<8x8x128xf32>
    %32 = arith.addf %25, %31 : vector<8x8x128xf32>
    %c0_6 = arith.constant 0 : index
    %c0_7 = arith.constant 0 : index
    %33 = vector.load %arg1[%c0_6, %c0_7] : memref<8x128xf32, #tpu.memory_space<vmem>>, vector<8x128xf32>
    %34 = vector.extract_strided_slice %32 {offsets = [0, 0, 0], sizes = [1, 8, 128], strides = [1, 1, 1]} : vector<8x8x128xf32> to vector<1x8x128xf32>
    %35 = vector.shape_cast %34 : vector<1x8x128xf32> to vector<8x128xf32>
    %36 = arith.truncf %33 : vector<8x128xf32> to vector<8x128xbf16>
    %c0_8 = arith.constant 0 : index
    %c0_9 = arith.constant 0 : index
    %37 = vector.load %arg3[%c0_8, %c0_9] : memref<128x128xbf16, #tpu.memory_space<vmem>>, vector<128x128xbf16>
    %cst = arith.constant dense<0.000000e+00> : vector<8x128xf32>
    %38 = tpu.matmul %36, %37, %cst {dimension_numbers = #tpu.dot_dimension_numbers<[1], [0], [0], [1], [0, 0, 1, 1], [], []>} : vector<8x128xbf16>, vector<128x128xbf16>, vector<8x128xf32> -> vector<8x128xf32>
    %39 = arith.addf %35, %38 : vector<8x128xf32>
    %40 = math.tanh %39 : vector<8x128xf32>
    %41 = vector.extract_strided_slice %32 {offsets = [1, 0, 0], sizes = [1, 8, 128], strides = [1, 1, 1]} : vector<8x8x128xf32> to vector<1x8x128xf32>
    %42 = vector.shape_cast %41 : vector<1x8x128xf32> to vector<8x128xf32>
    %43 = arith.truncf %40 : vector<8x128xf32> to vector<8x128xbf16>
    %c0_10 = arith.constant 0 : index
    %c0_11 = arith.constant 0 : index
    %44 = vector.load %arg3[%c0_10, %c0_11] : memref<128x128xbf16, #tpu.memory_space<vmem>>, vector<128x128xbf16>
    %cst_12 = arith.constant dense<0.000000e+00> : vector<8x128xf32>
    %45 = tpu.matmul %43, %44, %cst_12 {dimension_numbers = #tpu.dot_dimension_numbers<[1], [0], [0], [1], [0, 0, 1, 1], [], []>} : vector<8x128xbf16>, vector<128x128xbf16>, vector<8x128xf32> -> vector<8x128xf32>
    %46 = arith.addf %42, %45 : vector<8x128xf32>
    %47 = math.tanh %46 : vector<8x128xf32>
    %48 = vector.extract_strided_slice %32 {offsets = [2, 0, 0], sizes = [1, 8, 128], strides = [1, 1, 1]} : vector<8x8x128xf32> to vector<1x8x128xf32>
    %49 = vector.shape_cast %48 : vector<1x8x128xf32> to vector<8x128xf32>
    %50 = arith.truncf %47 : vector<8x128xf32> to vector<8x128xbf16>
    %c0_13 = arith.constant 0 : index
    %c0_14 = arith.constant 0 : index
    %51 = vector.load %arg3[%c0_13, %c0_14] : memref<128x128xbf16, #tpu.memory_space<vmem>>, vector<128x128xbf16>
    %cst_15 = arith.constant dense<0.000000e+00> : vector<8x128xf32>
    %52 = tpu.matmul %50, %51, %cst_15 {dimension_numbers = #tpu.dot_dimension_numbers<[1], [0], [0], [1], [0, 0, 1, 1], [], []>} : vector<8x128xbf16>, vector<128x128xbf16>, vector<8x128xf32> -> vector<8x128xf32>
    %53 = arith.addf %49, %52 : vector<8x128xf32>
    %54 = math.tanh %53 : vector<8x128xf32>
    %55 = vector.extract_strided_slice %32 {offsets = [3, 0, 0], sizes = [1, 8, 128], strides = [1, 1, 1]} : vector<8x8x128xf32> to vector<1x8x128xf32>
    %56 = vector.shape_cast %55 : vector<1x8x128xf32> to vector<8x128xf32>
    %57 = arith.truncf %54 : vector<8x128xf32> to vector<8x128xbf16>
    %c0_16 = arith.constant 0 : index
    %c0_17 = arith.constant 0 : index
    %58 = vector.load %arg3[%c0_16, %c0_17] : memref<128x128xbf16, #tpu.memory_space<vmem>>, vector<128x128xbf16>
    %cst_18 = arith.constant dense<0.000000e+00> : vector<8x128xf32>
    %59 = tpu.matmul %57, %58, %cst_18 {dimension_numbers = #tpu.dot_dimension_numbers<[1], [0], [0], [1], [0, 0, 1, 1], [], []>} : vector<8x128xbf16>, vector<128x128xbf16>, vector<8x128xf32> -> vector<8x128xf32>
    %60 = arith.addf %56, %59 : vector<8x128xf32>
    %61 = math.tanh %60 : vector<8x128xf32>
    %62 = vector.extract_strided_slice %32 {offsets = [4, 0, 0], sizes = [1, 8, 128], strides = [1, 1, 1]} : vector<8x8x128xf32> to vector<1x8x128xf32>
    %63 = vector.shape_cast %62 : vector<1x8x128xf32> to vector<8x128xf32>
    %64 = arith.truncf %61 : vector<8x128xf32> to vector<8x128xbf16>
    %c0_19 = arith.constant 0 : index
    %c0_20 = arith.constant 0 : index
    %65 = vector.load %arg3[%c0_19, %c0_20] : memref<128x128xbf16, #tpu.memory_space<vmem>>, vector<128x128xbf16>
    %cst_21 = arith.constant dense<0.000000e+00> : vector<8x128xf32>
    %66 = tpu.matmul %64, %65, %cst_21 {dimension_numbers = #tpu.dot_dimension_numbers<[1], [0], [0], [1], [0, 0, 1, 1], [], []>} : vector<8x128xbf16>, vector<128x128xbf16>, vector<8x128xf32> -> vector<8x128xf32>
    %67 = arith.addf %63, %66 : vector<8x128xf32>
    %68 = math.tanh %67 : vector<8x128xf32>
    %69 = vector.extract_strided_slice %32 {offsets = [5, 0, 0], sizes = [1, 8, 128], strides = [1, 1, 1]} : vector<8x8x128xf32> to vector<1x8x128xf32>
    %70 = vector.shape_cast %69 : vector<1x8x128xf32> to vector<8x128xf32>
    %71 = arith.truncf %68 : vector<8x128xf32> to vector<8x128xbf16>
    %c0_22 = arith.constant 0 : index
    %c0_23 = arith.constant 0 : index
    %72 = vector.load %arg3[%c0_22, %c0_23] : memref<128x128xbf16, #tpu.memory_space<vmem>>, vector<128x128xbf16>
    %cst_24 = arith.constant dense<0.000000e+00> : vector<8x128xf32>
    %73 = tpu.matmul %71, %72, %cst_24 {dimension_numbers = #tpu.dot_dimension_numbers<[1], [0], [0], [1], [0, 0, 1, 1], [], []>} : vector<8x128xbf16>, vector<128x128xbf16>, vector<8x128xf32> -> vector<8x128xf32>
    %74 = arith.addf %70, %73 : vector<8x128xf32>
    %75 = math.tanh %74 : vector<8x128xf32>
    %76 = vector.extract_strided_slice %32 {offsets = [6, 0, 0], sizes = [1, 8, 128], strides = [1, 1, 1]} : vector<8x8x128xf32> to vector<1x8x128xf32>
    %77 = vector.shape_cast %76 : vector<1x8x128xf32> to vector<8x128xf32>
    %78 = arith.truncf %75 : vector<8x128xf32> to vector<8x128xbf16>
    %c0_25 = arith.constant 0 : index
    %c0_26 = arith.constant 0 : index
    %79 = vector.load %arg3[%c0_25, %c0_26] : memref<128x128xbf16, #tpu.memory_space<vmem>>, vector<128x128xbf16>
    %cst_27 = arith.constant dense<0.000000e+00> : vector<8x128xf32>
    %80 = tpu.matmul %78, %79, %cst_27 {dimension_numbers = #tpu.dot_dimension_numbers<[1], [0], [0], [1], [0, 0, 1, 1], [], []>} : vector<8x128xbf16>, vector<128x128xbf16>, vector<8x128xf32> -> vector<8x128xf32>
    %81 = arith.addf %77, %80 : vector<8x128xf32>
    %82 = math.tanh %81 : vector<8x128xf32>
    %83 = vector.extract_strided_slice %32 {offsets = [7, 0, 0], sizes = [1, 8, 128], strides = [1, 1, 1]} : vector<8x8x128xf32> to vector<1x8x128xf32>
    %84 = vector.shape_cast %83 : vector<1x8x128xf32> to vector<8x128xf32>
    %85 = arith.truncf %82 : vector<8x128xf32> to vector<8x128xbf16>
    %c0_28 = arith.constant 0 : index
    %c0_29 = arith.constant 0 : index
    %86 = vector.load %arg3[%c0_28, %c0_29] : memref<128x128xbf16, #tpu.memory_space<vmem>>, vector<128x128xbf16>
    %cst_30 = arith.constant dense<0.000000e+00> : vector<8x128xf32>
    %87 = tpu.matmul %85, %86, %cst_30 {dimension_numbers = #tpu.dot_dimension_numbers<[1], [0], [0], [1], [0, 0, 1, 1], [], []>} : vector<8x128xbf16>, vector<128x128xbf16>, vector<8x128xf32> -> vector<8x128xf32>
    %88 = arith.addf %84, %87 : vector<8x128xf32>
    %89 = math.tanh %88 : vector<8x128xf32>
    %c0_31 = arith.constant 0 : index
    %c0_32 = arith.constant 0 : index
    %90 = vector.load %arg5[%c0_31, %c0_32] : memref<128x128xf32, #tpu.memory_space<vmem>>, vector<128x128xf32>
    %cst_33 = arith.constant dense<0.000000e+00> : vector<8x128xf32>
    %91 = tpu.matmul %89, %90, %cst_33 {dimension_numbers = #tpu.dot_dimension_numbers<[1], [0], [0], [1], [0, 0, 1, 1], [], []>} : vector<8x128xf32>, vector<128x128xf32>, vector<8x128xf32> -> vector<8x128xf32>
    %c0_34 = arith.constant 0 : index
    %c0_35 = arith.constant 0 : index
    %92 = vector.load %arg6[%c0_34, %c0_35] : memref<1x128xf32, #tpu.memory_space<vmem>>, vector<1x128xf32>
    %93 = vector.broadcast %92 : vector<1x128xf32> to vector<8x128xf32>
    %94 = arith.addf %91, %93 : vector<8x128xf32>
    %c0_36 = arith.constant 0 : index
    %c0_37 = arith.constant 0 : index
    %95 = vector.load %arg7[%c0_36, %c0_37] : memref<8x128xf32, #tpu.memory_space<vmem>>, vector<8x128xf32>
    tpu.vector_store %arg7[%c0_36, %c0_37], %94 {strides = array<i32>} : memref<8x128xf32, #tpu.memory_space<vmem>>, vector<8x128xf32>,
    return
  }
}

</mosaic_0001>

<bundles_post_ra>
// kernel: tpu_custom_call.1
= control target key start
LH: loop header
LB: loop body
LE: loop exit
PB: predicated region body
PF: predicated region fallthrough
CT: control target
= control target key end

     0   :  { %12 = vsyncpa [#allocation3], 0  ;;  %s1570_s0 = inlined_call_operand.vmem [shape: f32[8,8,4], index: 0, kind: input, shape index: {}]   ;;  %s1571_s1 = inlined_call_operand.vmem [shape: f32[8,128], index: 1, kind: input, shape index: {}]   ;;  %s1572_s2 = inlined_call_operand.vmem [shape: f32[4,128], index: 2, kind: input, shape index: {}]   ;;  %s1573_s3 = inlined_call_operand.vmem [shape: bf16[128,128], index: 3, kind: input, shape index: {}]   ;;  %s1574_s4 = inlined_call_operand.vmem [shape: f32[1,128], index: 4, kind: input, shape index: {}]   ;;  %s1575_s5 = inlined_call_operand.hbm [shape: f32[128,128], index: 5, kind: input, shape index: {}]   ;;  %s1576_s6 = inlined_call_operand.vmem [shape: f32[1,128], index: 6, kind: input, shape index: {}]   ;;  %s1577_s7 = inlined_call_operand.hbm [shape: f32[8,128], index: 7, kind: output, shape index: {}]  }
   0x1   :  { %13 = vsyncpa [#allocation4], 0  ;;  %s1195_s24 = smov [#allocation2]  }
   0x2   :  { %s29_s25 = sshll.u32 %s1195_s24, 4  ;;  %s30_s25 = int_to_ptr.vmem [resolvable:$true] %s29_s25 }
   0x3   :  { %s1159_s26 = scalar_lea.vmem %s30_s25, 2048  ;;  %p1164_p1 = scmp.lt.s32.totalorder %s30_s25, %s30_s25 }
   0x4   :  { %p1160_p0 = scmp.ne.s32.totalorder %s30_s25, %s1159_s26  ;;  %p1165_p2 = scmp.lt.s32.totalorder %s1159_s26, %s1159_s26 }
   0x6   :  { %p1166_p3 = por %p1165_p2, %p1164_p1 }
   0x8   :  { %p1167_p4 = pnand %p1166_p3, %p1160_p0 }
   0xa   :  { %1170 = shalt.err (!%p1167_p4)
}
   0xb   :  { %s1196_s27 = smov 128   ;;  %s1197_s28 = smov 8  }
   0xc   :  { %35 = dma.hbm_to_vmem [thread:$0]  %s1575_s5, 2048, %s30_s25, [#allocation3], %s1196_s27, %s1196_s27, %s1197_s28  }
   0xd   :  { %1191 = dma.done.wait [#allocation3], 2048  }
   0xe   :  { %1192 = vsyncadd [#allocation3], 4294965248  ;;  %v1198_v0 = vmov 0.0   ;;  %vm1199_vm0 = vmmov 0   ;;  %v1200_v1 = vmov 2   ;;  %v1201_v2 = vmov 0  }
   0xf   :  { %891 = vmatprep.subr.bf16.mxu0 %v1198_v0  ;;  %907 = vmatprep.mubr.msk.bf16.mxu0 %vm1199_vm0, %v1198_v0  ;;  %v1259_v3 = vld [vmem:[%s1573_s3 + $0x38] sm:$0xff]   ;;  %v1265_v4 = vld [vmem:[%s1573_s3 + $0x30] sm:$0xff]   ;;  %v1274_v5 = vld [vmem:[%s1573_s3 + $0x28] sm:$0xff]   ;;  %v1202_v8 = vmov 3   ;;  %v1203_v9 = vmov 1   ;;  %v91_v17 = vlaneseq  ;;  %s1204_s18 = smov [#allocation5]  }
  0x10   :  { %1098 = vset.pattern.permute.xlu1 %v1200_v1  ;;  %1096 = vset.pattern.permute.xlu0 %v1201_v2  ;;  %v42_v6 = vld [vmem:[%s1570_s0] sm:$0xff]  ;;  %v1297_v10 = vld [vmem:[%s1573_s3 + $0x18] sm:$0xff]   ;;  %v43_v11 = vld [vmem:[%s1570_s0 + $0x8] sm:$0xff]  ;;  %s783_s19 = sshll.u32 %s1204_s18, 4  ;;  %s784_s19 = int_to_ptr.vmem [resolvable:$true] %s783_s19 }
  0x11   :  { %911 = vmatprep.subr.bf16.mxu1 %v1198_v0  ;;  %927 = vmatprep.mubr.msk.bf16.mxu1 %vm1199_vm0, %v1198_v0  ;;  %v1286_v7 = vld [vmem:[%s1573_s3 + $0x20] sm:$0xff]   ;;  %v1309_v12 = vld [vmem:[%s1573_s3 + $0x10] sm:$0xff]   ;;  %v1319_v13 = vld [vmem:[%s1573_s3 + $0x8] sm:$0xff]   ;;  %v92_v18 = vshrl.u32 %v91_v17, 7  ;;  %s1171_s20 = scalar_lea.vmem %s784_s19, 128  ;;  %p1176_p6 = scmp.lt.s32.totalorder %s784_s19, %s784_s19 }
  0x12   :  { %892 = vmatpush3.bf16.msra.mxu0 %v1259_v3  ;;  %912 = vmatpush3.bf16.msra.mxu1 %v1259_v3  ;;  %v1329_v14 = vld [vmem:[%s1573_s3] sm:$0xff]   ;;  %v44_v48 = vld [vmem:[%s1570_s0 + $0x10] sm:$0xff]  ;;  %v45_v17 = vld [vmem:[%s1570_s0 + $0x18] sm:$0xff]  ;;  %p1172_p5 = scmp.ne.s32.totalorder %s784_s19, %s1171_s20  ;;  %p1177_p7 = scmp.lt.s32.totalorder %s1171_s20, %s1171_s20 }
  0x13   :  { %893 = vmatprep.subr.bf16.mxu0 %v1198_v0  ;;  %913 = vmatprep.subr.bf16.mxu1 %v1198_v0  ;;  %v274_v15 = vld [vmem:[%s1571_s1] sm:$0xff]  ;;  %v93_v19 = vsub.s32 0, %v92_v18  ;;  %v152_v23 = vsub.s32 1, %v92_v18  ;;  %v204_v24 = vsub.s32 2, %v92_v18  ;;  %v256_v31 = vsub.s32 3, %v92_v18 }
  0x14   :  { %171 = vperm.xlu1 %1098, %v42_v6   ;;  %53 = vperm.xlu0 %1096, %v42_v6   ;;  %v275_v16 = vpack.c.bf16 %v274_v15, %v274_v15  ;;  %v50_v20 = vld [vmem:[%s1572_s2] sm:$0xf]  ;;  %p1178_p8 = por %p1177_p7, %p1176_p6 }
  0x15   :  { %v1365_v22 = vrot.slane %v50_v20, %v93_v19  ;;  %v1368_v26 = vrot.slane %v50_v20, %v152_v23  ;;  %v1373_v27 = vld [vmem:[%s1574_s4] ss:$0 sm:$0xff]  ;;  %v1375_v29 = vrot.slane %v50_v20, %v204_v24  ;;  %v1380_v35 = vrot.slane %v50_v20, %v256_v31 }
  0x16   :  { %894 = vmatpush3.bf16.msra.mxu0 %v1265_v4  ;;  %914 = vmatpush3.bf16.msra.mxu1 %v1265_v4  ;;  %p1179_p9 = pnand %p1178_p8, %p1172_p5 }
  0x17   :  { %895 = vmatprep.subr.bf16.mxu0 %v1198_v0  ;;  %915 = vmatprep.subr.bf16.mxu1 %v1198_v0 }
  0x18   :  { %1099 = vset.pattern.permute.xlu1 %v1202_v8  ;;  %1097 = vset.pattern.permute.xlu0 %v1203_v9 }
  0x19   :  { %223 = vperm.xlu1 %1099, %v42_v6   ;;  %119 = vperm.xlu0 %1097, %v42_v6  }
  0x1a   :  { %896 = vmatpush3.bf16.msra.mxu0 %v1274_v5  ;;  %916 = vmatpush3.bf16.msra.mxu1 %v1274_v5 }
  0x1b   :  { %897 = vmatprep.subr.bf16.mxu0 %v1198_v0  ;;  %917 = vmatprep.subr.bf16.mxu1 %v1198_v0 }
  0x1d   :  { %1100 = vset.pattern.permute.xlu1 %v1201_v2  ;;  %123 = vperm.xlu0 %1097, %v43_v11  }
  0x1e   :  { %898 = vmatpush3.bf16.msra.mxu0 %v1286_v7  ;;  %918 = vmatpush3.bf16.msra.mxu1 %v1286_v7 }
  0x1f   :  { %899 = vmatprep.subr.bf16.mxu0 %v1198_v0  ;;  %919 = vmatprep.subr.bf16.mxu1 %v1198_v0 }
  0x20   :  { %58 = vperm.xlu1 %1100, %v43_v11  }
  0x21   :  { %1102 = vset.pattern.permute.xlu0 %v1202_v8 }
  0x22   :  { %900 = vmatpush3.bf16.msra.mxu0 %v1297_v10  ;;  %920 = vmatpush3.bf16.msra.mxu1 %v1297_v10 }
  0x23   :  { %901 = vmatprep.subr.bf16.mxu0 %v1198_v0  ;;  %921 = vmatprep.subr.bf16.mxu1 %v1198_v0 }
  0x24   :  { %1101 = vset.pattern.permute.xlu1 %v1200_v1  ;;  %227 = vperm.xlu0 %1102, %v43_v11  }
  0x25   :  { %175 = vperm.xlu1 %1101, %v43_v11  }
  0x26   :  { %902 = vmatpush3.bf16.msra.mxu0 %v1309_v12  ;;  %922 = vmatpush3.bf16.msra.mxu1 %v1309_v12 }
  0x27   :  { %903 = vmatprep.subr.bf16.mxu0 %v1198_v0  ;;  %923 = vmatprep.subr.bf16.mxu1 %v1198_v0 }
  0x28   :  { %1105 = vset.pattern.permute.xlu0 %v1200_v1 }
  0x29   :  { %1103 = vset.pattern.permute.xlu1 %v1201_v2  ;;  %179 = vperm.xlu0 %1105, %v44_v48  }
  0x2a   :  { %904 = vmatpush3.bf16.msra.mxu0 %v1319_v13  ;;  %924 = vmatpush3.bf16.msra.mxu1 %v1319_v13 }
  0x2b   :  { %905 = vmatprep.subr.bf16.mxu0 %v1198_v0  ;;  %925 = vmatprep.subr.bf16.mxu1 %v1198_v0 }
  0x2c   :  { %63 = vperm.xlu1 %1103, %v44_v48  }
  0x2d   :  { %1108 = vset.pattern.permute.xlu0 %v1203_v9 }
  0x2e   :  { %906 = vmatpush3.bf16.msra.mxu0 %v1329_v14  ;;  %926 = vmatpush3.bf16.msra.mxu1 %v1329_v14 }
  0x2f   :  { %931 = vmatprep.subr.bf16.mxu0 %v1198_v0  ;;  %951 = vmatprep.subr.bf16.mxu1 %v1198_v0 }
  0x30   :  { %1104 = vset.pattern.permute.xlu1 %v1203_v9  ;;  %131 = vperm.xlu0 %1108, %v45_v17  }
  0x31   :  { %908 = vmatmul.mubr.bf16.vlgmr.msra.gmra.mxu0 %v275_v16  ;;  %127 = vperm.xlu1 %1104, %v44_v48  }
  0x32   :  { %932 = vmatpush3.bf16.msra.mxu0 %v1259_v3  ;;  %947 = vmatprep.mubr.msk.bf16.mxu0 %vm1199_vm0, %v1198_v0 }
  0x33   :  { %933 = vmatprep.subr.bf16.mxu0 %v1198_v0 }
  0x34   :  { %1111 = vset.pattern.permute.xlu0 %v1201_v2 }
  0x35   :  { %1106 = vset.pattern.permute.xlu1 %v1202_v8 }
  0x36   :  { %934 = vmatpush3.bf16.msra.mxu0 %v1265_v4  ;;  %231 = vperm.xlu1 %1106, %v44_v48  }
  0x37   :  { %935 = vmatprep.subr.bf16.mxu0 %v1198_v0 }
  0x3a   :  { %936 = vmatpush3.bf16.msra.mxu0 %v1274_v5  ;;  %1107 = vset.pattern.permute.xlu1 %v1201_v2 }
  0x3b   :  { %937 = vmatprep.subr.bf16.mxu0 %v1198_v0  ;;  %68 = vperm.xlu1 %1107, %v45_v17  }
  0x3e   :  { %938 = vmatpush3.bf16.msra.mxu0 %v1286_v7 }
  0x3f   :  { %939 = vmatprep.subr.bf16.mxu0 %v1198_v0  ;;  %1109 = vset.pattern.permute.xlu1 %v1200_v1 }
  0x40   :  { %183 = vperm.xlu1 %1109, %v45_v17  }
  0x42   :  { %940 = vmatpush3.bf16.msra.mxu0 %v1297_v10 }
  0x43   :  { %941 = vmatprep.subr.bf16.mxu0 %v1198_v0 }
  0x44   :  { %1110 = vset.pattern.permute.xlu1 %v1202_v8 }
  0x45   :  { %235 = vperm.xlu1 %1110, %v45_v17  }
  0x46   :  { %942 = vmatpush3.bf16.msra.mxu0 %v1309_v12 }
  0x47   :  { %943 = vmatprep.subr.bf16.mxu0 %v1198_v0 }
  0x49   :  { %1112 = vset.pattern.permute.xlu1 %v1203_v9 }
  0x4a   :  { %944 = vmatpush3.bf16.msra.mxu0 %v1319_v13 }
  0x4b   :  { %945 = vmatprep.subr.bf16.mxu0 %v1198_v0 }
  0x4e   :  { %946 = vmatpush3.bf16.msra.mxu0 %v1329_v14 }
  0x4f   :  { %971 = vmatprep.subr.bf16.mxu0 %v1198_v0 }
  0x8f   :  { %v54_v21 = vpop.permute.xlu0 %53  ;;  %v172_v33 = vpop.permute.xlu1 %171 }
  0x90   :  { %v95_v25 = vmul.f32 %v1365_v22, %v54_v21  ;;  %v206_v34 = vmul.f32 %v1375_v29, %v172_v33 }
  0x92   :  { %v110_v30 = vadd.f32 %v1373_v27, %v95_v25 }
  0x94   :  { %v120_v28 = vpop.permute.xlu0 %119  ;;  %v224_v37 = vpop.permute.xlu1 %223 }
  0x95   :  { %v154_v32 = vmul.f32 %v1368_v26, %v120_v28  ;;  %v258_v38 = vmul.f32 %v1380_v35, %v224_v37 }
  0x97   :  { %v162_v36 = vadd.f32 %v154_v32, %v110_v30 }
  0x98   :  { %v124_v51 = vpop.permute.xlu0 %123 }
  0x99   :  { %v214_v39 = vadd.f32 %v206_v34, %v162_v36  ;;  %v155_v53 = vmul.f32 %v1368_v26, %v124_v51 }
  0x9b   :  { %v266_v40 = vadd.f32 %v258_v38, %v214_v39  ;;  %v59_v49 = vpop.permute.xlu1 %58 }
  0x9c   :  { %v96_v50 = vmul.f32 %v1365_v22, %v59_v49 }
  0x9e   :  { %v111_v52 = vadd.f32 %v1373_v27, %v96_v50 }
  0x9f   :  { %v228_v57 = vpop.permute.xlu0 %227 }
  0xa0   :  { %v176_v54 = vpop.permute.xlu1 %175  ;;  %v163_v55 = vadd.f32 %v155_v53, %v111_v52  ;;  %v259_v59 = vmul.f32 %v1380_v35, %v228_v57 }
  0xa1   :  { %v207_v56 = vmul.f32 %v1375_v29, %v176_v54 }
  0xa3   :  { %v215_v58 = vadd.f32 %v207_v56, %v163_v55 }
  0xa4   :  { %v180_v24 = vpop.permute.xlu0 %179 }
  0xa5   :  { %v267_v60 = vadd.f32 %v259_v59, %v215_v58  ;;  %v208_v28 = vmul.f32 %v1375_v29, %v180_v24 }
  0xa7   :  { %v64_v18 = vpop.permute.xlu1 %63 }
  0xa8   :  { %v97_v19 = vmul.f32 %v1365_v22, %v64_v18 }
  0xaa   :  { %v112_v21 = vadd.f32 %v1373_v27, %v97_v19 }
  0xac   :  { %v128_v20 = vpop.permute.xlu1 %127 }
  0xad   :  { %v156_v23 = vmul.f32 %v1368_v26, %v128_v20 }
  0xaf   :  { %v164_v25 = vadd.f32 %v156_v23, %v112_v21 }
  0xb1   :  { %v232_v30 = vpop.permute.xlu1 %231  ;;  %v216_v31 = vadd.f32 %v208_v28, %v164_v25 }
  0xb2   :  { %v260_v32 = vmul.f32 %v1380_v35, %v232_v30 }
  0xb4   :  { %v268_v33 = vadd.f32 %v260_v32, %v216_v31 }
  0xf1   :  { %v374_v41 = vpop.f32.mrf.mxu0 }
  0xf2   :  { %v380_v42 = vadd.f32 %v374_v41, %v266_v40 }
  0xf3   :  { %v909_v43 = vpop.f32.mrf.mxu0 }
  0xf4   :  { %1135 = vtanh.f32 %v380_v42  ;;  %v46_v42 = vld [vmem:[%s1570_s0 + $0x20] sm:$0xff]  ;;  %v69_v43 = vpop.permute.xlu1 %68 }
  0xf5   :  { %v377_v44 = vpop.f32.mrf.mxu0  ;;  %135 = vperm.xlu1 %1112, %v46_v42   ;;  %73 = vperm.xlu0 %1111, %v46_v42  }
  0xf6   :  { %v98_v44 = vmul.f32 %v1365_v22, %v69_v43 }
  0xf7   :  { %v910_v45 = vpop.f32.mrf.mxu0 }
  0xf8   :  { %v132_v45 = vpop.permute.xlu0 %131 }
  0xf9   :  { %1113 = vset.pattern.permute.xlu1 %v1200_v1  ;;  %1114 = vset.pattern.permute.xlu0 %v1202_v8  ;;  %v157_v48 = vmul.f32 %v1368_v26, %v132_v45 }
  0xfa   :  { %187 = vperm.xlu1 %1113, %v46_v42   ;;  %239 = vperm.xlu0 %1114, %v46_v42  }
  0xfe   :  { %1115 = vset.pattern.permute.xlu1 %v1201_v2  ;;  %1117 = vset.pattern.permute.xlu0 %v1200_v1 }
 0x101   :  { %v1136_v46 = vpop.eup %1135 }
 0x102   :  { %v382_v47 = vpack.c.bf16 %v1136_v46, %v1136_v46  ;;  %v184_v46 = vpop.permute.xlu1 %183 }
 0x103   :  { %v209_v49 = vmul.f32 %v1375_v29, %v184_v46  ;;  %v49_v46 = vld [vmem:[%s1570_s0 + $0x38] sm:$0xff] }
 0x104   :  { %928 = vmatmul.mubr.bf16.vlgmr.msra.gmra.mxu1 %v382_v47  ;;  %v113_v47 = vadd.f32 %v1373_v27, %v98_v44 }
 0x105   :  { %952 = vmatpush3.bf16.msra.mxu1 %v1259_v3  ;;  %967 = vmatprep.mubr.msk.bf16.mxu1 %vm1199_vm0, %v1198_v0 }
 0x106   :  { %953 = vmatprep.subr.bf16.mxu1 %v1198_v0  ;;  %v165_v50 = vadd.f32 %v157_v48, %v113_v47  ;;  %v236_v51 = vpop.permute.xlu1 %235  ;;  %v698_v47 = vld [vmem:[#allocation2 + $0x78] sm:$0xff]  ;;  %v697_v48 = vld [vmem:[#allocation2 + $0x70] sm:$0xff] }
 0x107   :  { %v261_v52 = vmul.f32 %v1380_v35, %v236_v51  ;;  %v694_v51 = vld [vmem:[#allocation2 + $0x58] sm:$0xff] }
 0x108   :  { %v217_v53 = vadd.f32 %v209_v49, %v165_v50  ;;  %v696_v49 = vld [vmem:[#allocation2 + $0x68] sm:$0xff]  ;;  %v695_v50 = vld [vmem:[#allocation2 + $0x60] sm:$0xff] }
 0x109   :  { %954 = vmatpush3.bf16.msra.mxu1 %v1265_v4 }
 0x10a   :  { %955 = vmatprep.subr.bf16.mxu1 %v1198_v0  ;;  %v269_v54 = vadd.f32 %v261_v52, %v217_v53  ;;  %v693_v52 = vld [vmem:[#allocation2 + $0x50] sm:$0xff] }
 0x10d   :  { %956 = vmatpush3.bf16.msra.mxu1 %v1274_v5 }
 0x10e   :  { %957 = vmatprep.subr.bf16.mxu1 %v1198_v0 }
 0x111   :  { %958 = vmatpush3.bf16.msra.mxu1 %v1286_v7 }
 0x112   :  { %959 = vmatprep.subr.bf16.mxu1 %v1198_v0 }
 0x115   :  { %960 = vmatpush3.bf16.msra.mxu1 %v1297_v10 }
 0x116   :  { %961 = vmatprep.subr.bf16.mxu1 %v1198_v0 }
 0x119   :  { %962 = vmatpush3.bf16.msra.mxu1 %v1309_v12 }
 0x11a   :  { %963 = vmatprep.subr.bf16.mxu1 %v1198_v0 }
 0x11d   :  { %964 = vmatpush3.bf16.msra.mxu1 %v1319_v13 }
 0x11e   :  { %965 = vmatprep.subr.bf16.mxu1 %v1198_v0 }
 0x121   :  { %966 = vmatpush3.bf16.msra.mxu1 %v1329_v14 }
 0x122   :  { %991 = vmatprep.subr.bf16.mxu1 %v1198_v0 }
 0x1c4   :  { %v417_v61 = vpop.f32.mrf.mxu1 }
 0x1c5   :  { %v423_v62 = vadd.f32 %v417_v61, %v267_v60 }
 0x1c6   :  { %v929_v63 = vpop.f32.mrf.mxu1 }
 0x1c7   :  { %1137 = vtanh.f32 %v423_v62  ;;  %v47_v62 = vld [vmem:[%s1570_s0 + $0x28] sm:$0xff]  ;;  %v74_v63 = vpop.permute.xlu0 %73 }
 0x1c8   :  { %v420_v6 = vpop.f32.mrf.mxu1  ;;  %78 = vperm.xlu1 %1115, %v47_v62   ;;  %191 = vperm.xlu0 %1117, %v47_v62  }
 0x1c9   :  { %v136_v6 = vpop.permute.xlu1 %135 }
 0x1ca   :  { %v930_v11 = vpop.f32.mrf.mxu1 }
 0x1cb   :  { %v99_v11 = vmul.f32 %v1365_v22, %v74_v63  ;;  %v240_v20 = vpop.permute.xlu0 %239 }
 0x1cc   :  { %1116 = vset.pattern.permute.xlu1 %v1203_v9  ;;  %1120 = vset.pattern.permute.xlu0 %v1203_v9  ;;  %v262_v23 = vmul.f32 %v1380_v35, %v240_v20  ;;  %v691_v20 = vld [vmem:[#allocation2 + $0x40] sm:$0xff] }
 0x1cd   :  { %139 = vperm.xlu1 %1116, %v47_v62   ;;  %v188_v17 = vpop.permute.xlu1 %187 }
 0x1ce   :  { %v210_v19 = vmul.f32 %v1375_v29, %v188_v17 }
 0x1d1   :  { %1118 = vset.pattern.permute.xlu1 %v1202_v8 }
 0x1d2   :  { %243 = vperm.xlu1 %1118, %v47_v62  }
 0x1d4   :  { %v1138_v15 = vpop.eup %1137 }
 0x1d5   :  { %v425_v16 = vpack.c.bf16 %v1138_v15, %v1138_v15  ;;  %v158_v15 = vmul.f32 %v1368_v26, %v136_v6 }
 0x1d6   :  { %1119 = vset.pattern.permute.xlu1 %v1201_v2 }
 0x1d7   :  { %948 = vmatmul.mubr.bf16.vlgmr.msra.gmra.mxu0 %v425_v16  ;;  %v114_v16 = vadd.f32 %v1373_v27, %v99_v11 }
 0x1d8   :  { %972 = vmatpush3.bf16.msra.mxu0 %v1259_v3  ;;  %987 = vmatprep.mubr.msk.bf16.mxu0 %vm1199_vm0, %v1198_v0 }
 0x1d9   :  { %973 = vmatprep.subr.bf16.mxu0 %v1198_v0  ;;  %v166_v18 = vadd.f32 %v158_v15, %v114_v16 }
 0x1db   :  { %v218_v21 = vadd.f32 %v210_v19, %v166_v18 }
 0x1dc   :  { %974 = vmatpush3.bf16.msra.mxu0 %v1265_v4 }
 0x1dd   :  { %975 = vmatprep.subr.bf16.mxu0 %v1198_v0  ;;  %v270_v24 = vadd.f32 %v262_v23, %v218_v21  ;;  %v690_v21 = vld [vmem:[#allocation2 + $0x38] sm:$0xff]  ;;  %v689_v23 = vld [vmem:[#allocation2 + $0x30] sm:$0xff] }
 0x1e0   :  { %976 = vmatpush3.bf16.msra.mxu0 %v1274_v5 }
 0x1e1   :  { %977 = vmatprep.subr.bf16.mxu0 %v1198_v0 }
 0x1e4   :  { %978 = vmatpush3.bf16.msra.mxu0 %v1286_v7 }
 0x1e5   :  { %979 = vmatprep.subr.bf16.mxu0 %v1198_v0 }
 0x1e8   :  { %980 = vmatpush3.bf16.msra.mxu0 %v1297_v10 }
 0x1e9   :  { %981 = vmatprep.subr.bf16.mxu0 %v1198_v0 }
 0x1ec   :  { %982 = vmatpush3.bf16.msra.mxu0 %v1309_v12 }
 0x1ed   :  { %983 = vmatprep.subr.bf16.mxu0 %v1198_v0 }
 0x1f0   :  { %984 = vmatpush3.bf16.msra.mxu0 %v1319_v13 }
 0x1f1   :  { %985 = vmatprep.subr.bf16.mxu0 %v1198_v0 }
 0x1f4   :  { %986 = vmatpush3.bf16.msra.mxu0 %v1329_v14 }
 0x1f5   :  { %1011 = vmatprep.subr.bf16.mxu0 %v1198_v0 }
 0x297   :  { %v460_v34 = vpop.f32.mrf.mxu0 }
 0x298   :  { %v466_v36 = vadd.f32 %v460_v34, %v268_v33 }
 0x299   :  { %v949_v37 = vpop.f32.mrf.mxu0 }
 0x29a   :  { %1139 = vtanh.f32 %v466_v36 }
 0x29b   :  { %v463_v38 = vpop.f32.mrf.mxu0 }
 0x29d   :  { %v950_v39 = vpop.f32.mrf.mxu0 }
 0x2a7   :  { %v1140_v40 = vpop.eup %1139 }
 0x2a8   :  { %v468_v41 = vpack.c.bf16 %v1140_v40, %v1140_v40 }
 0x2aa   :  { %968 = vmatmul.mubr.bf16.vlgmr.msra.gmra.mxu1 %v468_v41 }
 0x2ab   :  { %992 = vmatpush3.bf16.msra.mxu1 %v1259_v3  ;;  %1007 = vmatprep.mubr.msk.bf16.mxu1 %vm1199_vm0, %v1198_v0 }
 0x2ac   :  { %993 = vmatprep.subr.bf16.mxu1 %v1198_v0 }
 0x2af   :  { %994 = vmatpush3.bf16.msra.mxu1 %v1265_v4 }
 0x2b0   :  { %995 = vmatprep.subr.bf16.mxu1 %v1198_v0 }
 0x2b3   :  { %996 = vmatpush3.bf16.msra.mxu1 %v1274_v5 }
 0x2b4   :  { %997 = vmatprep.subr.bf16.mxu1 %v1198_v0 }
 0x2b7   :  { %998 = vmatpush3.bf16.msra.mxu1 %v1286_v7 }
 0x2b8   :  { %999 = vmatprep.subr.bf16.mxu1 %v1198_v0 }
 0x2bb   :  { %1000 = vmatpush3.bf16.msra.mxu1 %v1297_v10 }
 0x2bc   :  { %1001 = vmatprep.subr.bf16.mxu1 %v1198_v0 }
 0x2bf   :  { %1002 = vmatpush3.bf16.msra.mxu1 %v1309_v12 }
 0x2c0   :  { %1003 = vmatprep.subr.bf16.mxu1 %v1198_v0 }
 0x2c3   :  { %1004 = vmatpush3.bf16.msra.mxu1 %v1319_v13 }
 0x2c4   :  { %1005 = vmatprep.subr.bf16.mxu1 %v1198_v0 }
 0x2c7   :  { %1006 = vmatpush3.bf16.msra.mxu1 %v1329_v14 }
 0x2c8   :  { %1031 = vmatprep.subr.bf16.mxu1 %v1198_v0 }
 0x36a   :  { %v503_v55 = vpop.f32.mrf.mxu1 }
 0x36b   :  { %v509_v56 = vadd.f32 %v503_v55, %v269_v54 }
 0x36c   :  { %v969_v57 = vpop.f32.mrf.mxu1 }
 0x36d   :  { %1141 = vtanh.f32 %v509_v56 }
 0x36e   :  { %v506_v58 = vpop.f32.mrf.mxu1 }
 0x370   :  { %v970_v59 = vpop.f32.mrf.mxu1 }
 0x37a   :  { %v1142_v60 = vpop.eup %1141 }
 0x37b   :  { %v511_v61 = vpack.c.bf16 %v1142_v60, %v1142_v60 }
 0x37d   :  { %988 = vmatmul.mubr.bf16.vlgmr.msra.gmra.mxu0 %v511_v61 }
 0x37e   :  { %1012 = vmatpush3.bf16.msra.mxu0 %v1259_v3  ;;  %1027 = vmatprep.mubr.msk.bf16.mxu0 %vm1199_vm0, %v1198_v0 }
 0x37f   :  { %1013 = vmatprep.subr.bf16.mxu0 %v1198_v0 }
 0x382   :  { %1014 = vmatpush3.bf16.msra.mxu0 %v1265_v4 }
 0x383   :  { %1015 = vmatprep.subr.bf16.mxu0 %v1198_v0 }
 0x386   :  { %1016 = vmatpush3.bf16.msra.mxu0 %v1274_v5 }
 0x387   :  { %1017 = vmatprep.subr.bf16.mxu0 %v1198_v0 }
 0x38a   :  { %1018 = vmatpush3.bf16.msra.mxu0 %v1286_v7 }
 0x38b   :  { %1019 = vmatprep.subr.bf16.mxu0 %v1198_v0 }
 0x38e   :  { %1020 = vmatpush3.bf16.msra.mxu0 %v1297_v10 }
 0x38f   :  { %1021 = vmatprep.subr.bf16.mxu0 %v1198_v0 }
 0x392   :  { %1022 = vmatpush3.bf16.msra.mxu0 %v1309_v12 }
 0x393   :  { %1023 = vmatprep.subr.bf16.mxu0 %v1198_v0 }
 0x396   :  { %1024 = vmatpush3.bf16.msra.mxu0 %v1319_v13 }
 0x397   :  { %1025 = vmatprep.subr.bf16.mxu0 %v1198_v0 }
 0x39a   :  { %1026 = vmatpush3.bf16.msra.mxu0 %v1329_v14 }
 0x39b   :  { %1051 = vmatprep.subr.mxu0 %v1198_v0 }
 0x43d   :  { %v546_v25 = vpop.f32.mrf.mxu0 }
 0x43e   :  { %v552_v28 = vadd.f32 %v546_v25, %v270_v24  ;;  %v688_v24 = vld [vmem:[#allocation2 + $0x28] sm:$0xff]  ;;  %v687_v25 = vld [vmem:[#allocation2 + $0x20] sm:$0xff] }
 0x43f   :  { %v989_v30 = vpop.f32.mrf.mxu0 }
 0x440   :  { %1143 = vtanh.f32 %v552_v28  ;;  %v686_v28 = vld [vmem:[#allocation2 + $0x18] sm:$0xff]  ;;  %v685_v30 = vld [vmem:[#allocation2 + $0x10] sm:$0xff] }
 0x441   :  { %v549_v31 = vpop.f32.mrf.mxu0 }
 0x442   :  { %v684_v31 = vld [vmem:[#allocation2 + $0x8] sm:$0xff] }
 0x443   :  { %v990_v32 = vpop.f32.mrf.mxu0 }
 0x444   :  { %v683_v32 = vld [vmem:[#allocation2] sm:$0xff] }
 0x44d   :  { %v1144_v33 = vpop.eup %1143 }
 0x44e   :  { %v554_v34 = vpack.c.bf16 %v1144_v33, %v1144_v33 }
 0x450   :  { %1008 = vmatmul.mubr.bf16.vlgmr.msra.gmra.mxu1 %v554_v34 }
 0x451   :  { %1032 = vmatpush3.bf16.msra.mxu1 %v1259_v3  ;;  %1047 = vmatprep.mubr.msk.bf16.mxu1 %vm1199_vm0, %v1198_v0  ;;  %v48_v3 = vld [vmem:[%s1570_s0 + $0x30] sm:$0xff] }
 0x452   :  { %1033 = vmatprep.subr.bf16.mxu1 %v1198_v0  ;;  %83 = vperm.xlu1 %1119, %v48_v3  }
 0x453   :  { %143 = vperm.xlu0 %1120, %v48_v3  }
 0x455   :  { %1034 = vmatpush3.bf16.msra.mxu1 %v1265_v4  ;;  %v79_v4 = vpop.permute.xlu1 %78 }
 0x456   :  { %1035 = vmatprep.subr.bf16.mxu1 %v1198_v0  ;;  %1121 = vset.pattern.permute.xlu1 %v1200_v1 }
 0x457   :  { %1123 = vset.pattern.permute.xlu0 %v1201_v2  ;;  %195 = vperm.xlu1 %1121, %v48_v3  }
 0x458   :  { %88 = vperm.xlu0 %1123, %v49_v46  }
 0x459   :  { %1036 = vmatpush3.bf16.msra.mxu1 %v1274_v5  ;;  %v100_v5 = vmul.f32 %v1365_v22, %v79_v4 }
 0x45a   :  { %1037 = vmatprep.subr.bf16.mxu1 %v1198_v0 }
 0x45b   :  { %1122 = vset.pattern.permute.xlu1 %v1202_v8 }
 0x45c   :  { %247 = vperm.xlu1 %1122, %v48_v3   ;;  %1126 = vset.pattern.permute.xlu0 %v1202_v8 }
 0x45d   :  { %1038 = vmatpush3.bf16.msra.mxu1 %v1286_v7  ;;  %v140_v7 = vpop.permute.xlu1 %139  ;;  %251 = vperm.xlu0 %1126, %v49_v46  }
 0x45e   :  { %1039 = vmatprep.subr.bf16.mxu1 %v1198_v0 }
 0x460   :  { %1124 = vset.pattern.permute.xlu1 %v1203_v9 }
 0x461   :  { %1040 = vmatpush3.bf16.msra.mxu1 %v1297_v10  ;;  %v115_v10 = vadd.f32 %v1373_v27, %v100_v5  ;;  %v244_v37 = vpop.permute.xlu1 %243  ;;  %147 = vperm.xlu1 %1124, %v49_v46  }
 0x462   :  { %1041 = vmatprep.subr.bf16.mxu1 %v1198_v0  ;;  %v263_v38 = vmul.f32 %v1380_v35, %v244_v37 }
 0x465   :  { %1042 = vmatpush3.bf16.msra.mxu1 %v1309_v12  ;;  %v159_v12 = vmul.f32 %v1368_v26, %v140_v7  ;;  %1125 = vset.pattern.permute.xlu1 %v1200_v1  ;;  %v692_v1 = vld [vmem:[#allocation2 + $0x48] sm:$0xff] }
 0x466   :  { %1043 = vmatprep.subr.bf16.mxu1 %v1198_v0  ;;  %199 = vperm.xlu1 %1125, %v49_v46  }
 0x469   :  { %1044 = vmatpush3.bf16.msra.mxu1 %v1319_v13  ;;  %v192_v13 = vpop.permute.xlu0 %191 }
 0x46a   :  { %1045 = vmatprep.subr.bf16.mxu1 %v1198_v0  ;;  %v211_v36 = vmul.f32 %v1375_v29, %v192_v13 }
 0x46d   :  { %1046 = vmatpush3.bf16.msra.mxu1 %v1329_v14  ;;  %v167_v14 = vadd.f32 %v159_v12, %v115_v10 }
 0x46f   :  { %v219_v2 = vadd.f32 %v211_v36, %v167_v14 }
 0x471   :  { %v271_v39 = vadd.f32 %v263_v38, %v219_v2 }
 0x4cd   :  { %v84_v8 = vpop.permute.xlu1 %83 }
 0x4ce   :  { %v101_v53 = vmul.f32 %v1365_v22, %v84_v8  ;;  %v144_v54 = vpop.permute.xlu0 %143 }
 0x4cf   :  { %v160_v57 = vmul.f32 %v1368_v26, %v144_v54 }
 0x4d0   :  { %v116_v56 = vadd.f32 %v1373_v27, %v101_v53 }
 0x4d2   :  { %v196_v55 = vpop.permute.xlu1 %195  ;;  %v168_v59 = vadd.f32 %v160_v57, %v116_v56 }
 0x4d3   :  { %v212_v58 = vmul.f32 %v1375_v29, %v196_v55  ;;  %v89_v33 = vpop.permute.xlu0 %88 }
 0x4d4   :  { %v102_v3 = vmul.f32 %v1365_v22, %v89_v33 }
 0x4d5   :  { %v220_v62 = vadd.f32 %v212_v58, %v168_v59 }
 0x4d6   :  { %v117_v5 = vadd.f32 %v1373_v27, %v102_v3 }
 0x4d7   :  { %v248_v60 = vpop.permute.xlu1 %247 }
 0x4d8   :  { %v264_v61 = vmul.f32 %v1380_v35, %v248_v60  ;;  %v252_v13 = vpop.permute.xlu0 %251 }
 0x4d9   :  { %v265_v36 = vmul.f32 %v1380_v35, %v252_v13 }
 0x4da   :  { %v272_v63 = vadd.f32 %v264_v61, %v220_v62 }
 0x4dc   :  { %v148_v34 = vpop.permute.xlu1 %147 }
 0x4dd   :  { %v161_v4 = vmul.f32 %v1368_v26, %v148_v34  ;;  %v801_v26 = vld [vmem:[%s1576_s6] ss:$0 sm:$0xff] }
 0x4df   :  { %v169_v10 = vadd.f32 %v161_v4, %v117_v5 }
 0x4e1   :  { %v200_v7 = vpop.permute.xlu1 %199 }
 0x4e2   :  { %v213_v12 = vmul.f32 %v1375_v29, %v200_v7 }
 0x4e4   :  { %v221_v14 = vadd.f32 %v213_v12, %v169_v10 }
 0x4e6   :  { %v273_v37 = vadd.f32 %v265_v36, %v221_v14 }
 0x510   :  { %v589_v40 = vpop.f32.mrf.mxu1 }
 0x511   :  { %v595_v41 = vadd.f32 %v589_v40, %v271_v39 }
 0x512   :  { %v1009_v9 = vpop.f32.mrf.mxu1 }
 0x513   :  { %1145 = vtanh.f32 %v595_v41 }
 0x514   :  { %v592_v42 = vpop.f32.mrf.mxu1 }
 0x516   :  { %v1010_v43 = vpop.f32.mrf.mxu1 }
 0x520   :  { %v1146_v44 = vpop.eup %1145 }
 0x521   :  { %v597_v45 = vpack.c.bf16 %v1146_v44, %v1146_v44 }
 0x523   :  { %1028 = vmatmul.mubr.bf16.vlgmr.msra.gmra.mxu0 %v597_v45 }
 0x524   :  { %1083 = vmatprep.mubr.msk.f32.mxu0 %vm1199_vm0, %v1198_v0  ;;  %1052 = vmatpush3.msra.mxu0 %v698_v47 }
 0x525   :  { %1053 = vmatprep.subr.mxu0 %v1198_v0 }
 0x526   :  { %1054 = vmatpush3.msra.mxu0 %v697_v48 }
 0x527   :  { %1055 = vmatprep.subr.mxu0 %v1198_v0 }
 0x528   :  { %1056 = vmatpush3.msra.mxu0 %v696_v49 }
 0x529   :  { %1057 = vmatprep.subr.mxu0 %v1198_v0 }
 0x52a   :  { %1058 = vmatpush3.msra.mxu0 %v695_v50 }
 0x52b   :  { %1059 = vmatprep.subr.mxu0 %v1198_v0 }
 0x52c   :  { %1060 = vmatpush3.msra.mxu0 %v694_v51 }
 0x52d   :  { %1061 = vmatprep.subr.mxu0 %v1198_v0 }
 0x52e   :  { %1062 = vmatpush3.msra.mxu0 %v693_v52 }
 0x52f   :  { %1063 = vmatprep.subr.mxu0 %v1198_v0 }
 0x530   :  { %1064 = vmatpush3.msra.mxu0 %v692_v1 }
 0x531   :  { %1065 = vmatprep.subr.mxu0 %v1198_v0 }
 0x532   :  { %1066 = vmatpush3.msra.mxu0 %v691_v20 }
 0x533   :  { %1067 = vmatprep.subr.mxu0 %v1198_v0 }
 0x534   :  { %1068 = vmatpush3.msra.mxu0 %v690_v21 }
 0x535   :  { %1069 = vmatprep.subr.mxu0 %v1198_v0 }
 0x536   :  { %1070 = vmatpush3.msra.mxu0 %v689_v23 }
 0x537   :  { %1071 = vmatprep.subr.mxu0 %v1198_v0 }
 0x538   :  { %1072 = vmatpush3.msra.mxu0 %v688_v24 }
 0x539   :  { %1073 = vmatprep.subr.mxu0 %v1198_v0 }
 0x53a   :  { %1074 = vmatpush3.msra.mxu0 %v687_v25 }
 0x53b   :  { %1075 = vmatprep.subr.mxu0 %v1198_v0 }
 0x53c   :  { %1076 = vmatpush3.msra.mxu0 %v686_v28 }
 0x53d   :  { %1077 = vmatprep.subr.mxu0 %v1198_v0 }
 0x53e   :  { %1078 = vmatpush3.msra.mxu0 %v685_v30 }
 0x53f   :  { %1079 = vmatprep.subr.mxu0 %v1198_v0 }
 0x540   :  { %1080 = vmatpush3.msra.mxu0 %v684_v31 }
 0x541   :  { %1081 = vmatprep.subr.mxu0 %v1198_v0 }
 0x542   :  { %1082 = vmatpush3.msra.mxu0 %v683_v32 }
 0x5e3   :  { %v632_v6 = vpop.f32.mrf.mxu0 }
 0x5e4   :  { %v638_v11 = vadd.f32 %v632_v6, %v272_v63 }
 0x5e5   :  { %v1029_v15 = vpop.f32.mrf.mxu0 }
 0x5e6   :  { %1147 = vtanh.f32 %v638_v11 }
 0x5e7   :  { %v635_v16 = vpop.f32.mrf.mxu0 }
 0x5e9   :  { %v1030_v17 = vpop.f32.mrf.mxu0 }
 0x5f3   :  { %v1148_v18 = vpop.eup %1147 }
 0x5f4   :  { %v640_v19 = vpack.c.bf16 %v1148_v18, %v1148_v18 }
 0x5f6   :  { %1048 = vmatmul.mubr.bf16.vlgmr.msra.gmra.mxu1 %v640_v19 }
 0x6b6   :  { %v675_v2 = vpop.f32.mrf.mxu1 }
 0x6b7   :  { %v681_v0 = vadd.f32 %v675_v2, %v273_v37 }
 0x6b8   :  { %v1049_v38 = vpop.f32.mrf.mxu1 }
 0x6b9   :  { %1149 = vtanh.f32 %v681_v0 }
 0x6ba   :  { %v678_v39 = vpop.f32.mrf.mxu1 }
 0x6bc   :  { %v1050_v40 = vpop.f32.mrf.mxu1 }
 0x6c6   :  { %v1150_v22 = vpop.eup %1149 }
 0x6c7   :  { %1084 = vmatmul.mubr.f32.vlgmr.msra.gmra.mxu0 %v1150_v22 }
 0x787   :  { %v772_v27 = vpop.f32.mrf.mxu0 }
 0x788   :  { %v773_v29 = vadd.f32 %v801_v26, %v772_v27 }
 0x789   :  { %v1085_v41 = vpop.f32.mrf.mxu0 }
 0x78a   :  { %776 = vst [vmem:[#allocation5] sm:$0xff] %v773_v29 }
 0x78b   :  { %1182 = shalt.err (!%p1179_p9)
}
 0x78c   :  { %786 = dma.vmem_to_hbm [thread:$0]  %s784_s19, 128, %s1577_s7, [#allocation4]  }
 0x78d   :  { %1193 = dma.done.wait [#allocation4], 128  }
 0x78e   :  { %1194 = vsyncadd [#allocation4], 4294967168 }
 0x78f   :  { %790 = vsyncpa [#allocation3], 1 }
 0x790   :  { %791 = vsyncpa [#allocation4], 1 }

</bundles_post_ra>
